<compile_context>
chip_gen: v7x
topology: tpu7x:2x2x1
jax: 0.10.0
libtpu: 0.0.40
codegen_flags: <defaults>
</compile_context>

<pallas_src>
import jax
import jax.numpy as jnp
from jax.experimental import pallas as pl
from jax.experimental.pallas import tpu as pltpu


def _copy_kernel(x_ref, o_ref):
    # Pure identity copy between identically shaped, lane-dense 2D tiles.
    # All the "unflattening" is metadata handled in the wrapper.
    o_ref[...] = x_ref[...]


def _prod(xs):
    n = 1
    for d in xs:
        n *= int(d)
    return n


def unflatten(x, dims, *, materialize=False, alias_input=False,
              block_rows=512, block_cols=1024):
    """Pallas equivalent of `Unflatten(*dims)(x)` (i.e. x.view(-1, *dims)).

    materialize=False (default): pure view -> metadata-only reshape, no kernel.
    materialize=True: launch a lane-dense Pallas copy that produces a fresh
    contiguous buffer with the unflattened shape.
    alias_input: only set True when the caller donates x (otherwise XLA adds
    a defensive copy and HBM traffic doubles).
    """
    dims = tuple(int(d) for d in dims)
    n = _prod(dims)

    total = int(x.size)
    if total % n != 0:
        # Match torch's view() error behavior instead of silently truncating.
        raise ValueError(
            f"unflatten: input of size {total} is not divisible by "
            f"prod(dims)={n} for dims={dims}"
        )
    B = total // n
    out_shape = (B,) + dims

    if not materialize:
        # Fast path (the semantically faithful one): Unflatten is a pure
        # view, so a contiguous-array reshape is metadata-only in XLA.
        return jnp.reshape(x, out_shape)

    # Tiling sanity: big blocks must stay (8, 128)-aligned.
    assert block_rows % 8 == 0 and block_cols % 128 == 0

    itemsize = jnp.dtype(x.dtype).itemsize
    cost = pl.CostEstimate(flops=0, transcendentals=0,
                           bytes_accessed=2 * total * itemsize)
    io_alias = {0: 0} if alias_input else {}
    cparams = None  # set per path below

    # ---- Preferred path: flatten + re-chunk into a lane-dense (rows, C) slab.
    candidates = [c for c in (1024, 512, 256, 128)
                  if c <= block_cols and total % c == 0]
    if candidates:
        # Prefer a chunk width that also makes the row count a multiple of 8
        # (fully dense (8,128) vregs); otherwise take the widest chunk.
        dense = [c for c in candidates if (total // c) % 8 == 0]
        C = max(dense) if dense else max(candidates)
        rows = total // C
        bm = rows if rows <= block_rows else block_rows  # full extent or 8-aligned

        x_slab = jnp.reshape(x, (rows, C))  # metadata-only on contiguous input
        out_slab = pl.pallas_call(
            _copy_kernel,
            out_shape=jax.ShapeDtypeStruct((rows, C), x.dtype),
            grid=(pl.cdiv(rows, bm),),
            in_specs=[pl.BlockSpec((bm, C), lambda i: (i, 0))],
            out_specs=pl.BlockSpec((bm, C), lambda i: (i, 0)),
            input_output_aliases=io_alias,
            cost_estimate=cost,
            compiler_params=pltpu.CompilerParams(
                # Lets v7x shard row tiles across its two TensorCores when
                # there is more than one tile; no-op on single-TC v5e/v6e.
                dimension_semantics=("parallel",),
            ),
        )(x_slab)
        return jnp.reshape(out_slab, out_shape)

    # ---- Fallback: logical (B, n) tiling (boundary blocks masked by Pallas).
    bm = B if B <= block_rows else block_rows
    bn = n if n <= block_cols else block_cols
    x2 = jnp.reshape(x, (B, n))
    out2 = pl.pallas_call(
        _copy_kernel,
        out_shape=jax.ShapeDtypeStruct((B, n), x.dtype),
        grid=(pl.cdiv(B, bm), pl.cdiv(n, bn)),
        in_specs=[pl.BlockSpec((bm, bn), lambda i, j: (i, j))],
        out_specs=pl.BlockSpec((bm, bn), lambda i, j: (i, j)),
        input_output_aliases=io_alias,
        cost_estimate=cost,
        compiler_params=pltpu.CompilerParams(
            dimension_semantics=("parallel", "parallel"),
        ),
    )(x2)
    return jnp.reshape(out2, out_shape)


if __name__ == "__main__":
    # Small shapes consistent with the module: unflatten a (B, C*H*W) vector
    # back into (B, C, H, W) feature maps, e.g. dims = (4, 16, 16).
    dims = (4, 16, 16)
    B = 2
    key = jax.random.PRNGKey(0)
    x = jax.random.normal(key, (B, dims[0] * dims[1] * dims[2]), dtype=jnp.float32)

    # Kernel path (materializing copy) — exercises the Pallas kernel.
    y_kernel = unflatten(x, dims, materialize=True)
    y_kernel = jax.block_until_ready(y_kernel)

    # Default fast path — pure metadata reshape (what Unflatten really is).
    y_view = unflatten(x, dims)
    y_view = jax.block_until_ready(y_view)

    # Reference semantics: torch's input.view(-1, *dims)
    y_ref = jnp.reshape(x, (-1,) + dims)
    assert y_kernel.shape == (B,) + dims, (y_kernel.shape, (B,) + dims)
    assert y_kernel.dtype == x.dtype
    assert jnp.array_equal(y_kernel, y_ref), "Pallas unflatten mismatch vs reference"
    assert y_view.shape == (B,) + dims
    assert jnp.array_equal(y_view, y_ref), "View-path unflatten mismatch vs reference"

    print("KERNEL_OK")
</pallas_src>

<mosaic_0001>
module attributes {stable_mosaic.version = 11 : i64} {
  func.func @_copy_kernel(%arg0: i32, %arg1: memref<8x256xf32, #tpu.memory_space<vmem>>, %arg2: memref<8x256xf32, #tpu.memory_space<vmem>>) attributes {dimension_semantics = [#tpu.dimension_semantics<parallel>], iteration_bounds = array<i64: 1>, scalar_prefetch = 0 : i64, scratch_operands = 0 : i64, tpu.core_type = #tpu.core_type<tc>, window_params = [{transform_indices = @transform_0, window_bounds = array<i64: 8, 256>}, {transform_indices = @transform_1, window_bounds = array<i64: 8, 256>}]} {
    %c0 = arith.constant 0 : index
    %c0_0 = arith.constant 0 : index
    %0 = vector.load %arg1[%c0, %c0_0] : memref<8x256xf32, #tpu.memory_space<vmem>>, vector<8x256xf32>
    %c0_1 = arith.constant 0 : index
    %c0_2 = arith.constant 0 : index
    %1 = vector.load %arg2[%c0_1, %c0_2] : memref<8x256xf32, #tpu.memory_space<vmem>>, vector<8x256xf32>
    tpu.vector_store %arg2[%c0_1, %c0_2], %0 {strides = array<i32>} : memref<8x256xf32, #tpu.memory_space<vmem>>, vector<8x256xf32>,
    return
  }
  func.func @transform_0(%arg0: i32) -> (i32, i32) {
    %c0_i32 = arith.constant 0 : i32
    %c0_i32_0 = arith.constant 0 : i32
    return %arg0, %c0_i32 : i32, i32
  }
  func.func @transform_1(%arg0: i32) -> (i32, i32) {
    %c0_i32 = arith.constant 0 : i32
    %c0_i32_0 = arith.constant 0 : i32
    return %arg0, %c0_i32 : i32, i32
  }
}

</mosaic_0001>

<bundles_post_ra>
// kernel: tpu_custom_call.1
= control target key start
LH: loop header
LB: loop body
LE: loop exit
PB: predicated region body
PF: predicated region fallthrough
CT: control target
= control target key end

     0   :  { %6 = vsyncpa [#allocation3], 0  ;;  %s126_s0 = inlined_call_operand.hbm [shape: f32[8,256], index: 0, kind: input, shape index: {}]   ;;  %s127_s1 = inlined_call_operand.hbm [shape: f32[8,256], index: 1, kind: output, shape index: {}]  }
   0x1   :  { %7 = vsyncpa [#allocation4], 0  ;;  %s90_s6 = smov [#allocation2]   ;;  %s42_s10 = scalar_lea.hbm %s126_s0, 256 }
   0x2   :  { %s14_s7 = sshll.u32 %s90_s6, 4  ;;  %p43_p0 = scmp.ne.s32.totalorder %s126_s0, %s42_s10  ;;  %s15_s7 = int_to_ptr.vmem [resolvable:$true] %s14_s7 }
   0x3   :  { %p46_p1 = scmp.lt.u32.totalorder %s42_s10, %s126_s0 }
   0x5   :  { %p48_p2 = pnand %p46_p1, %p43_p0 }
   0x7   :  { %51 = shalt.err (!%p48_p2)
}
   0x8   :  { %s52_s15 = scalar_lea.vmem %s15_s7, 256  ;;  %p57_p4 = scmp.lt.s32.totalorder %s15_s7, %s15_s7 }
   0x9   :  { %p53_p3 = scmp.ne.s32.totalorder %s15_s7, %s52_s15  ;;  %p58_p5 = scmp.lt.s32.totalorder %s52_s15, %s52_s15 }
   0xb   :  { %p59_p6 = por %p58_p5, %p57_p4 }
   0xd   :  { %p60_p7 = pnand %p59_p6, %p53_p3 }
   0xf   :  { %63 = shalt.err (!%p60_p7)
}
  0x10   :  { %17 = dma.hbm_to_vmem [thread:$0]  %s126_s0, 256, %s15_s7, [#allocation3]  }
  0x11   :  { %86 = dma.done.wait [#allocation3], 256  }
  0x12   :  { %87 = vsyncadd [#allocation3], 4294967040  ;;  %s91_s18 = smov [#allocation5]   ;;  %v21_v0 = vld [vmem:[#allocation2] sm:$0xff]  ;;  %v22_v1 = vld [vmem:[#allocation2 + $0x8] sm:$0xff] }
  0x13   :  { %s31_s19 = sshll.u32 %s91_s18, 4  ;;  %23 = vst [vmem:[#allocation5] sm:$0xff] %v21_v0  ;;  %24 = vst [vmem:[#allocation5 + $0x8] sm:$0xff] %v22_v1  ;;  %s32_s19 = int_to_ptr.vmem [resolvable:$true] %s31_s19 }
  0x14   :  { %s64_s20 = scalar_lea.vmem %s32_s19, 256  ;;  %p69_p9 = scmp.lt.s32.totalorder %s32_s19, %s32_s19 }
  0x15   :  { %p65_p8 = scmp.ne.s32.totalorder %s32_s19, %s64_s20  ;;  %p70_p10 = scmp.lt.s32.totalorder %s64_s20, %s64_s20 }
  0x17   :  { %p71_p11 = por %p70_p10, %p69_p9 }
  0x19   :  { %p72_p12 = pnand %p71_p11, %p65_p8 }
  0x1b   :  { %75 = shalt.err (!%p72_p12)
}
  0x1c   :  { %s76_s0 = scalar_lea.hbm %s127_s1, 256 }
  0x1d   :  { %p77_p13 = scmp.ne.s32.totalorder %s127_s1, %s76_s0  ;;  %p80_p0 = scmp.lt.u32.totalorder %s76_s0, %s127_s1 }
  0x1f   :  { %p82_p1 = pnand %p80_p0, %p77_p13 }
  0x21   :  { %85 = shalt.err (!%p82_p1)
}
  0x22   :  { %34 = dma.vmem_to_hbm [thread:$0]  %s32_s19, 256, %s127_s1, [#allocation4]  }
  0x23   :  { %88 = dma.done.wait [#allocation4], 256  }
  0x24   :  { %89 = vsyncadd [#allocation4], 4294967040 }
  0x25   :  { %38 = vsyncpa [#allocation3], 1 }
  0x26   :  { %39 = vsyncpa [#allocation4], 1 }

</bundles_post_ra>
